<compile_context>
chip_gen: v6e
topology: v6e:2x2x1
jax: 0.10.0
libtpu: 0.0.40
codegen_flags: <defaults>
</compile_context>

<pallas_src>
import math

import jax
import jax.numpy as jnp
from jax import lax
from jax.experimental import pallas as pl
from jax.experimental.pallas import tpu as pltpu


# ---------------------------------------------------------------------------
# Time-parallel input projection: pre = X @ W_in^T  (hoisted out of the
# sequential recurrence, grid over row tiles marked "parallel").
# ---------------------------------------------------------------------------
def _input_proj_kernel(x_ref, w_ref, o_ref):
    o_ref[...] = jnp.dot(x_ref[...], w_ref[...],
                         preferred_element_type=jnp.float32).astype(o_ref.dtype)


def input_projection(x2d, w_in_t, *, tm=512):
    """pre = x2d @ w_in_t  with x2d: (M, K), w_in_t: (K, N)."""
    M, K = x2d.shape
    N = w_in_t.shape[1]
    tm = M if M <= tm else tm
    return pl.pallas_call(
        _input_proj_kernel,
        out_shape=jax.ShapeDtypeStruct((M, N), x2d.dtype),
        grid_spec=pltpu.PrefetchScalarGridSpec(
            num_scalar_prefetch=0,
            grid=(pl.cdiv(M, tm),),
            in_specs=[pl.BlockSpec((tm, K), lambda i: (i, 0)),
                      pl.BlockSpec((K, N), lambda i: (0, 0))],
            out_specs=pl.BlockSpec((tm, N), lambda i: (i, 0)),
        ),
        compiler_params=pltpu.CompilerParams(
            dimension_semantics=("parallel",)),
    )(x2d, w_in_t)


# ---------------------------------------------------------------------------
# Single-step kernel (exact analogue of RNNHardCell.forward).
# Accumulator stays in vregs; the (possibly garbage) y is neutralized by a
# select on the hidden state, never by multiply-by-zero.
# ---------------------------------------------------------------------------
def _rnn_hard_cell_step_kernel(state_ref, x_ref, y_ref, win_ref, wh_ref,
                               out_ref, state_out_ref):
    h = jnp.where(state_ref[0] != 0, y_ref[...], 0.0)
    acc = jnp.dot(x_ref[...], win_ref[...], preferred_element_type=jnp.float32)
    acc = acc + jnp.dot(h, wh_ref[...], preferred_element_type=jnp.float32)
    out_ref[...] = jnp.clip(acc, -1.0, 1.0).astype(out_ref.dtype)   # hardtanh
    s = state_ref[0]
    state_out_ref[0] = jnp.where(s == 0, jnp.int32(1), s)


def rnn_hard_cell(x, y, w_in_t, w_h_t, state):
    """One RNNHardCell step.  Prefer rnn_hard_cell_sequence for whole sequences
    (this path pays per-call launch overhead + an HBM round trip of h)."""
    B, _ = x.shape
    n_hidden = w_in_t.shape[1]
    state_arr = jnp.asarray(state, dtype=jnp.int32).reshape((1,))

    y_out, new_state = pl.pallas_call(
        _rnn_hard_cell_step_kernel,
        out_shape=(jax.ShapeDtypeStruct((B, n_hidden), x.dtype),
                   jax.ShapeDtypeStruct((1,), jnp.int32)),
        in_specs=[
            pl.BlockSpec(memory_space=pltpu.SMEM),   # state scalar
            pl.BlockSpec(memory_space=pltpu.VMEM),   # x
            pl.BlockSpec(memory_space=pltpu.VMEM),   # y (prev hidden)
            pl.BlockSpec(memory_space=pltpu.VMEM),   # W_in^T
            pl.BlockSpec(memory_space=pltpu.VMEM),   # W_h^T
        ],
        out_specs=(pl.BlockSpec(memory_space=pltpu.VMEM),
                   pl.BlockSpec(memory_space=pltpu.SMEM)),
    )(state_arr, x, y, w_in_t, w_h_t)
    return y_out, new_state[0]


# ---------------------------------------------------------------------------
# Fused sequence kernel: grid over chunks of `tb` timesteps ("arbitrary"),
# W_h^T resident in VMEM, hidden state carried in vregs within a chunk and in
# a VMEM scratch across chunks.  Only the pre-projected inputs are streamed.
# ---------------------------------------------------------------------------
def _make_seq_kernel(tb):
    def kernel(state_ref, pre_ref, y0_ref, wh_ref,
               yseq_ref, state_out_ref, h_ref):
        c = pl.program_id(0)

        @pl.when(c == 0)
        def _init():
            # state==0 -> start from zeros (recurrent term is exactly 0; the
            #             possibly-NaN y0 is never selected).
            # state!=0 -> resume from the provided hidden state.
            h_ref[...] = jnp.where(state_ref[0] != 0, y0_ref[...],
                                   0.0).astype(h_ref.dtype)
            s = state_ref[0]
            state_out_ref[0] = jnp.where(s == 0, jnp.int32(1), s)

        wh = wh_ref[...]   # resident in VMEM for the whole sequence

        def step(t, h):
            acc = pre_ref[t] + jnp.dot(h, wh,
                                       preferred_element_type=jnp.float32)
            y_t = jnp.clip(acc, -1.0, 1.0)                   # hardtanh
            yseq_ref[t] = y_t.astype(yseq_ref.dtype)
            return y_t

        # Unrolled inner loop over the timestep block: accumulator and hidden
        # state stay in vregs; one VMEM store of h per chunk (cross-chunk carry).
        h_ref[...] = lax.fori_loop(0, tb, step, h_ref[...], unroll=True)

    return kernel


def rnn_hard_cell_sequence(xs, y0, w_in_t, w_h_t, state, *, chunk=None):
    """Run the cell over a whole sequence xs: (T, B, n_input).

    Returns (y_seq (T, B, n_hidden), final_state) like T applications of the
    PyTorch module's forward.
    """
    T, B, n_input = xs.shape
    n_hidden = w_h_t.shape[1]
    state_arr = jnp.asarray(state, dtype=jnp.int32).reshape((1,))

    # (1) Time-parallel input projection, hoisted out of the serial loop.
    pre = input_projection(xs.reshape(T * B, n_input), w_in_t)
    pre = pre.reshape(T, B, n_hidden)

    # (2) Timestep-block size per grid iteration (amortizes per-step overhead).
    tb = T if chunk is None else max(1, min(int(chunk), T))
    if T % tb != 0:
        tb = math.gcd(T, tb)

    grid_spec = pltpu.PrefetchScalarGridSpec(
        num_scalar_prefetch=1,
        grid=(T // tb,),
        in_specs=[
            pl.BlockSpec((tb, B, n_hidden), lambda c, s: (c, 0, 0)),   # pre chunk streamed
            pl.BlockSpec((B, n_hidden), lambda c, s: (0, 0)),          # y0 resident
            pl.BlockSpec((n_hidden, n_hidden), lambda c, s: (0, 0)),   # W_h^T resident
        ],
        out_specs=(
            pl.BlockSpec((tb, B, n_hidden), lambda c, s: (c, 0, 0)),   # y chunk streamed out
            pl.BlockSpec(memory_space=pltpu.SMEM),                     # new_state
        ),
        scratch_shapes=[pltpu.VMEM((B, n_hidden), jnp.float32)],       # hidden-state carry
    )

    y_seq, new_state = pl.pallas_call(
        _make_seq_kernel(tb),
        out_shape=(jax.ShapeDtypeStruct((T, B, n_hidden), xs.dtype),
                   jax.ShapeDtypeStruct((1,), jnp.int32)),
        grid_spec=grid_spec,
        compiler_params=pltpu.CompilerParams(
            dimension_semantics=("arbitrary",)),   # time recurrence is serial
    )(state_arr, pre, y0, w_h_t)
    return y_seq, new_state[0]


# ---------------------------------------------------------------------------
# Pure-JAX reference (mirrors the PyTorch forward).
# ---------------------------------------------------------------------------
def _reference_step(x, y, w_in_t, w_h_t, state):
    pre = x @ w_in_t
    if int(state) != 0:
        pre = pre + y @ w_h_t
    new_state = 1 if int(state) == 0 else int(state)
    return jnp.clip(pre, -1.0, 1.0), new_state


if __name__ == "__main__":
    B, n_input, n_hidden, T = 8, 256, 128, 8

    key = jax.random.PRNGKey(0)
    kx, kwi, kwh, kh = jax.random.split(key, 4)

    xs = jax.random.normal(kx, (T, B, n_input), dtype=jnp.float32)

    # PyTorch Linear weights are (out_features, in_features); transpose ONCE at
    # parameter-init time so kernels do plain x @ W MXU matmuls.
    bound_in = 1.0 / (n_input ** 0.5)
    bound_h = 1.0 / (n_hidden ** 0.5)
    w_in = jax.random.uniform(kwi, (n_hidden, n_input), dtype=jnp.float32,
                              minval=-bound_in, maxval=bound_in)
    w_h = jax.random.uniform(kwh, (n_hidden, n_hidden), dtype=jnp.float32,
                             minval=-bound_h, maxval=bound_h)
    w_in_t = jnp.transpose(w_in)    # (n_input, n_hidden), done once
    w_h_t = jnp.transpose(w_h)      # (n_hidden, n_hidden), done once

    # "Uninitialized" hidden state full of NaN: PyTorch never evaluates h_h(y)
    # when state == 0, so the output must still be finite.
    y_nan = jnp.full((B, n_hidden), jnp.nan, dtype=jnp.float32)

    # --- single-step kernel, state == 0 branch (NaN y0 must not leak) ---
    y0, s0 = rnn_hard_cell(xs[0], y_nan, w_in_t, w_h_t, 0)
    y0 = jax.block_until_ready(y0)
    ref0, rs0 = _reference_step(xs[0], y_nan, w_in_t, w_h_t, 0)
    assert bool(jnp.all(jnp.isfinite(y0)))
    assert jnp.allclose(y0, ref0, atol=1e-5, rtol=1e-5)
    assert int(s0) == rs0 == 1

    # --- single-step kernel, state != 0 branch ---
    y1, s1 = rnn_hard_cell(xs[1], y0, w_in_t, w_h_t, int(s0))
    y1 = jax.block_until_ready(y1)
    ref1, rs1 = _reference_step(xs[1], y0, w_in_t, w_h_t, int(s0))
    assert jnp.allclose(y1, ref1, atol=1e-5, rtol=1e-5)
    assert int(s1) == rs1 == 1

    # --- reference sequence, cold start (state 0, NaN y0) ---
    refs, h, st = [], y_nan, 0
    for t in range(T):
        h, st = _reference_step(xs[t], h, w_in_t, w_h_t, st)
        refs.append(h)
    ref_seq = jnp.stack(refs)

    # --- fused sequence kernel: whole sequence in one grid iteration ---
    y_seq, s_seq = rnn_hard_cell_sequence(xs, y_nan, w_in_t, w_h_t, 0)
    y_seq = jax.block_until_ready(y_seq)
    assert bool(jnp.all(jnp.isfinite(y_seq)))
    assert jnp.allclose(y_seq, ref_seq, atol=1e-4, rtol=1e-5)
    assert int(s_seq) == 1

    # --- chunked variant (grid of 2): exercises cross-chunk hidden carry ---
    y_seq_c, s_seq_c = rnn_hard_cell_sequence(xs, y_nan, w_in_t, w_h_t, 0,
                                              chunk=4)
    y_seq_c = jax.block_until_ready(y_seq_c)
    assert jnp.allclose(y_seq_c, ref_seq, atol=1e-4, rtol=1e-5)
    assert int(s_seq_c) == 1

    # --- warm start (state != 0, real y0 provided) ---
    y_init = jax.random.normal(kh, (B, n_hidden), dtype=jnp.float32)
    refs, h, st = [], y_init, 1
    for t in range(T):
        h, st = _reference_step(xs[t], h, w_in_t, w_h_t, st)
        refs.append(h)
    ref_seq_w = jnp.stack(refs)
    y_seq_w, s_seq_w = rnn_hard_cell_sequence(xs, y_init, w_in_t, w_h_t, 1)
    y_seq_w = jax.block_until_ready(y_seq_w)
    assert jnp.allclose(y_seq_w, ref_seq_w, atol=1e-4, rtol=1e-5)
    assert int(s_seq_w) == 1

    print("KERNEL_OK")
</pallas_src>

<mosaic_0001>
module attributes {stable_mosaic.version = 11 : i64} {
  func.func @_rnn_hard_cell_step_kernel(%arg0: memref<1xi32, #tpu.memory_space<smem>>, %arg1: memref<8x256xf32, #tpu.memory_space<vmem>>, %arg2: memref<8x128xf32, #tpu.memory_space<vmem>>, %arg3: memref<256x128xf32, #tpu.memory_space<vmem>>, %arg4: memref<128x128xf32, #tpu.memory_space<vmem>>, %arg5: memref<8x128xf32, #tpu.memory_space<vmem>>, %arg6: memref<1xi32, #tpu.memory_space<smem>>) attributes {dimension_semantics = [], scalar_prefetch = 0 : i64, scratch_operands = 0 : i64, tpu.core_type = #tpu.core_type<tc>} {
    %c0 = arith.constant 0 : index
    %0 = memref.load %arg0[%c0] : memref<1xi32, #tpu.memory_space<smem>>
    %c0_i32 = arith.constant 0 : i32
    %1 = arith.cmpi ne, %0, %c0_i32 : i32
    %c0_0 = arith.constant 0 : index
    %c0_1 = arith.constant 0 : index
    %2 = vector.load %arg2[%c0_0, %c0_1] : memref<8x128xf32, #tpu.memory_space<vmem>>, vector<8x128xf32>
    %cst = arith.constant 0.000000e+00 : f32
    %3 = vector.broadcast %cst : f32 to vector<8x128xf32>
    %4 = arith.select %1, %2, %3 : vector<8x128xf32>
    %c0_2 = arith.constant 0 : index
    %c0_3 = arith.constant 0 : index
    %5 = vector.load %arg1[%c0_2, %c0_3] : memref<8x256xf32, #tpu.memory_space<vmem>>, vector<8x256xf32>
    %c0_4 = arith.constant 0 : index
    %c0_5 = arith.constant 0 : index
    %6 = vector.load %arg3[%c0_4, %c0_5] : memref<256x128xf32, #tpu.memory_space<vmem>>, vector<256x128xf32>
    %cst_6 = arith.constant dense<0.000000e+00> : vector<8x128xf32>
    %7 = tpu.matmul %5, %6, %cst_6 {dimension_numbers = #tpu.dot_dimension_numbers<[1], [0], [0], [1], [0, 0, 1, 1], [], []>} : vector<8x256xf32>, vector<256x128xf32>, vector<8x128xf32> -> vector<8x128xf32>
    %c0_7 = arith.constant 0 : index
    %c0_8 = arith.constant 0 : index
    %8 = vector.load %arg4[%c0_7, %c0_8] : memref<128x128xf32, #tpu.memory_space<vmem>>, vector<128x128xf32>
    %cst_9 = arith.constant dense<0.000000e+00> : vector<8x128xf32>
    %9 = tpu.matmul %4, %8, %cst_9 {dimension_numbers = #tpu.dot_dimension_numbers<[1], [0], [0], [1], [0, 0, 1, 1], [], []>} : vector<8x128xf32>, vector<128x128xf32>, vector<8x128xf32> -> vector<8x128xf32>
    %10 = arith.addf %7, %9 : vector<8x128xf32>
    %cst_10 = arith.constant -1.000000e+00 : f32
    %cst_11 = arith.constant 1.000000e+00 : f32
    %11 = vector.broadcast %cst_10 : f32 to vector<8x128xf32>
    %12 = arith.maximumf %11, %10 : vector<8x128xf32>
    %13 = vector.broadcast %cst_11 : f32 to vector<8x128xf32>
    %14 = arith.minimumf %13, %12 : vector<8x128xf32>
    %c0_12 = arith.constant 0 : index
    %c0_13 = arith.constant 0 : index
    %15 = vector.load %arg5[%c0_12, %c0_13] : memref<8x128xf32, #tpu.memory_space<vmem>>, vector<8x128xf32>
    tpu.vector_store %arg5[%c0_12, %c0_13], %14 {strides = array<i32>} : memref<8x128xf32, #tpu.memory_space<vmem>>, vector<8x128xf32>,
    %c0_14 = arith.constant 0 : index
    %16 = memref.load %arg0[%c0_14] : memref<1xi32, #tpu.memory_space<smem>>
    %c0_i32_15 = arith.constant 0 : i32
    %17 = arith.cmpi eq, %16, %c0_i32_15 : i32
    %c1_i32 = arith.constant 1 : i32
    %18 = arith.select %17, %c1_i32, %16 : i32
    %c0_16 = arith.constant 0 : index
    %19 = memref.load %arg6[%c0_16] : memref<1xi32, #tpu.memory_space<smem>>
    memref.store %18, %arg6[%c0_16] : memref<1xi32, #tpu.memory_space<smem>>
    return
  }
}

</mosaic_0001>

<bundles_post_ra>
// kernel: tpu_custom_call.1
= control target key start
LH: loop header
LB: loop body
LE: loop exit
PB: predicated region body
PF: predicated region fallthrough
CT: control target
= control target key end

     0   :  { %13 = vsyncpa [#allocation4], 0  ;;  %s621_s0 = inlined_call_operand.<no memory space> [shape: s32[1], index: 0, kind: input, shape index: {}]   ;;  %s622_s1 = inlined_call_operand.hbm [shape: f32[8,256], index: 1, kind: input, shape index: {}]   ;;  %s623_s2 = inlined_call_operand.hbm [shape: f32[8,128], index: 2, kind: input, shape index: {}]   ;;  %s624_s3 = inlined_call_operand.hbm [shape: f32[256,128], index: 3, kind: input, shape index: {}]   ;;  %s625_s4 = inlined_call_operand.hbm [shape: f32[128,128], index: 4, kind: input, shape index: {}]   ;;  %s626_s5 = inlined_call_operand.hbm [shape: f32[8,128], index: 5, kind: output, shape index: {0}]   ;;  %s627_s6 = inlined_call_operand.hbm [shape: s32[1], index: 6, kind: output, shape index: {1}]  }
   0x1   :  { %14 = vsyncpa [#allocation8], 0 }
   0x2   :  { %15 = vsyncpa [#allocation11], 0 }
   0x3   :  { %16 = vsyncpa [#allocation5], 0 }
   0x4   :  { %17 = vsyncpa [#allocation6], 0  ;;  %s528_s21 = smov [#allocation7]   ;;  %s529_s23 = smov [#allocation3]  }
   0x5   :  { %s36_s22 = sshll.u32 %s528_s21, 4  ;;  %s26_s24 = sshll.u32 %s529_s23, 4  ;;  %s37_s22 = int_to_ptr.vmem [resolvable:$true] %s36_s22  ;;  %s27_s24 = int_to_ptr.vmem [resolvable:$true] %s26_s24 }
   0x6   :  { %s418_s25 = scalar_lea.vmem %s37_s22, 128  ;;  %p423_p1 = scmp.lt.s32.totalorder %s37_s22, %s37_s22 }
   0x7   :  { %p419_p0 = scmp.ne.s32.totalorder %s37_s22, %s418_s25  ;;  %p424_p2 = scmp.lt.s32.totalorder %s418_s25, %s418_s25 }
   0x9   :  { %p425_p3 = por %p424_p2, %p423_p1 }
   0xb   :  { %p426_p4 = pnand %p425_p3, %p419_p0 }
   0xd   :  { %429 = shalt.err (!%p426_p4)
}
   0xe   :  { %39 = dma.hbm_to_vmem [thread:$0]  %s623_s2, 128, %s37_s22, [#allocation8]  }
   0xf   :  { %s438_s28 = scalar_lea.vmem %s27_s24, 256  ;;  %p443_p6 = scmp.lt.s32.totalorder %s27_s24, %s27_s24 }
  0x10   :  { %p439_p5 = scmp.ne.s32.totalorder %s27_s24, %s438_s28  ;;  %p444_p7 = scmp.lt.s32.totalorder %s438_s28, %s438_s28 }
  0x12   :  { %p445_p8 = por %p444_p7, %p443_p6 }
  0x14   :  { %p446_p9 = pnand %p445_p8, %p439_p5 }
  0x16   :  { %449 = shalt.err (!%p446_p9)
}
  0x17   :  { %29 = dma.hbm_to_vmem [thread:$0]  %s622_s1, 256, %s27_s24, [#allocation4]  }
  0x18   :  { %s530_s7 = smov [#allocation9]  }
  0x19   :  { %s45_s8 = sshll.u32 %s530_s7, 4  ;;  %s46_s8 = int_to_ptr.vmem [resolvable:$true] %s45_s8 }
  0x1a   :  { %s458_s9 = scalar_lea.vmem %s46_s8, 4096  ;;  %p463_p11 = scmp.lt.s32.totalorder %s46_s8, %s46_s8 }
  0x1b   :  { %p459_p10 = scmp.ne.s32.totalorder %s46_s8, %s458_s9  ;;  %p464_p12 = scmp.lt.s32.totalorder %s458_s9, %s458_s9 }
  0x1d   :  { %p465_p13 = por %p464_p12, %p463_p11 }
  0x1f   :  { %p466_p0 = pnand %p465_p13, %p459_p10 }
  0x21   :  { %469 = shalt.err (!%p466_p0)
}
  0x22   :  { %s531_s2 = smov 128   ;;  %s532_s10 = smov 8  }
  0x23   :  { %51 = dma.hbm_to_vmem [thread:$0]  %s624_s3, 4096, %s46_s8, [#allocation8], %s531_s2, %s531_s2, %s532_s10  }
  0x24   :  { %s533_s13 = smov [#allocation10]  }
  0x25   :  { %s57_s14 = sshll.u32 %s533_s13, 4  ;;  %s58_s14 = int_to_ptr.vmem [resolvable:$true] %s57_s14 }
  0x26   :  { %s478_s1 = scalar_lea.vmem %s58_s14, 2048  ;;  %p483_p2 = scmp.lt.s32.totalorder %s58_s14, %s58_s14 }
  0x27   :  { %p479_p1 = scmp.ne.s32.totalorder %s58_s14, %s478_s1  ;;  %p484_p3 = scmp.lt.s32.totalorder %s478_s1, %s478_s1 }
  0x29   :  { %p485_p4 = por %p484_p3, %p483_p2 }
  0x2b   :  { %p486_p5 = pnand %p485_p4, %p479_p1 }
  0x2d   :  { %489 = shalt.err (!%p486_p5)
}
  0x2e   :  { %63 = dma.hbm_to_vmem [thread:$0]  %s625_s4, 2048, %s58_s14, [#allocation11], %s531_s2, %s531_s2, %s532_s10  }
  0x2f   :  { %518 = dma.done.wait [#allocation4], 256  }
  0x30   :  { %519 = vsyncadd [#allocation4], 4294967040 }
  0x31   :  { %520 = dma.done.wait [#allocation8], 4224  }
  0x32   :  { %521 = vsyncadd [#allocation8], 4294963072 }
  0x33   :  { %522 = dma.done.wait [#allocation11], 2048  }
  0x34   :  { %523 = vsyncadd [#allocation11], 4294965248  ;;  %v534_v0 = vmov 0.0   ;;  %vm535_vm0 = vmmov 0   ;;  %v116_v1 = vld [vmem:[#allocation9 + $0xf8] sm:$0xff]  ;;  %v115_v3 = vld [vmem:[#allocation9 + $0xf0] sm:$0xff] }
  0x35   :  { %365 = vmatprep.subr.mxu0 %v534_v0  ;;  %397 = vmatprep.mubr.msk.f32.mxu0 %vm535_vm0, %v534_v0  ;;  %v100_v2 = vld [vmem:[#allocation9 + $0x78] sm:$0xff]  ;;  %v99_v5 = vld [vmem:[#allocation9 + $0x70] sm:$0xff]  ;;  %v114_v6 = vld [vmem:[#allocation9 + $0xe8] sm:$0xff]  ;;  %p77_p6 = scmp.ne.s32.totalorder %s621_s0, 0  ;;  %p277_p7 = scmp.eq.s32.totalorder %s621_s0, 0 }
  0x36   :  { %330 = vmatprep.subr.mxu1 %v116_v1  ;;  %v132_v4 = vld [vmem:[#allocation10 + $0x78] sm:$0xff]  ;;  %v131_v7 = vld [vmem:[#allocation10 + $0x70] sm:$0xff]  ;;  %v98_v8 = vld [vmem:[#allocation9 + $0x68] sm:$0xff]  ;;  %s536_s24 = smov [#allocation13]   ;;  %s537_s27 = smov [#allocation12]  }
  0x37   :  { %331 = vmatpush3.msra.mxu1 %v100_v2  ;;  %366 = vmatpush3.msra.mxu0 %v132_v4  ;;  %v130_v9 = vld [vmem:[#allocation10 + $0x68] sm:$0xff]  ;;  %v113_v10 = vld [vmem:[#allocation9 + $0xe0] sm:$0xff]  ;;  %v112_v13 = vld [vmem:[#allocation9 + $0xd8] sm:$0xff]  ;;  %s79_s19 = scalar_select %p77_p6, 1, 0 }
  0x38   :  { %332 = vmatprep.subr.mxu1 %v115_v3  ;;  %367 = vmatprep.subr.mxu0 %v534_v0  ;;  %v97_v11 = vld [vmem:[#allocation9 + $0x60] sm:$0xff]  ;;  %v96_v14 = vld [vmem:[#allocation9 + $0x58] sm:$0xff]  ;;  %v111_v16 = vld [vmem:[#allocation9 + $0xd0] sm:$0xff]  ;;  %s629_s0 = smov (%p277_p7, %s621_s0), 1  ;;  %s287_s28 = sshll.u32 %s537_s27, 4  ;;  %s288_s28 = int_to_ptr.vmem [resolvable:$true] %s287_s28 }
  0x39   :  { %333 = vmatpush3.msra.mxu1 %v99_v5  ;;  %368 = vmatpush3.msra.mxu0 %v131_v7  ;;  %v129_v12 = vld [vmem:[#allocation10 + $0x60] sm:$0xff]  ;;  %v128_v15 = vld [vmem:[#allocation10 + $0x58] sm:$0xff]  ;;  %v95_v17 = vld [vmem:[#allocation9 + $0x50] sm:$0xff]  ;;  %v80_v48 = vstv %s79_s19  ;;  %280 = sst [smem:[#allocation13]] %s629_s0  ;;  %s498_s29 = scalar_lea.vmem %s288_s28, 128 }
  0x3a   :  { %334 = vmatprep.subr.mxu1 %v114_v6  ;;  %369 = vmatprep.subr.mxu0 %v534_v0  ;;  %v127_v18 = vld [vmem:[#allocation10 + $0x50] sm:$0xff]  ;;  %v110_v19 = vld [vmem:[#allocation9 + $0xc8] sm:$0xff]  ;;  %v109_v22 = vld [vmem:[#allocation9 + $0xc0] sm:$0xff]  ;;  %vm81_vm1 = vcmp.eq.s32.totalorder %v80_v48, 1  ;;  %298 = dma.smem_to_hbm %s536_s24, 16, %s627_s6, [#allocation6]  }
  0x3b   :  { %335 = vmatpush3.msra.mxu1 %v98_v8  ;;  %370 = vmatpush3.msra.mxu0 %v130_v9  ;;  %v94_v20 = vld [vmem:[#allocation9 + $0x48] sm:$0xff]  ;;  %v93_v23 = vld [vmem:[#allocation9 + $0x40] sm:$0xff]  ;;  %v108_v25 = vld [vmem:[#allocation9 + $0xb8] sm:$0xff]  ;;  %p499_p8 = scmp.ne.s32.totalorder %s288_s28, %s498_s29  ;;  %p503_p9 = scmp.lt.s32.totalorder %s288_s28, %s288_s28 }
  0x3c   :  { %336 = vmatprep.subr.mxu1 %v113_v10  ;;  %371 = vmatprep.subr.mxu0 %v534_v0  ;;  %v126_v21 = vld [vmem:[#allocation10 + $0x48] sm:$0xff]  ;;  %v125_v24 = vld [vmem:[#allocation10 + $0x40] sm:$0xff]  ;;  %v92_v26 = vld [vmem:[#allocation9 + $0x38] sm:$0xff]  ;;  %p504_p10 = scmp.lt.s32.totalorder %s498_s29, %s498_s29 }
  0x3d   :  { %337 = vmatpush3.msra.mxu1 %v97_v11  ;;  %372 = vmatpush3.msra.mxu0 %v129_v12  ;;  %v124_v27 = vld [vmem:[#allocation10 + $0x38] sm:$0xff]  ;;  %v107_v28 = vld [vmem:[#allocation9 + $0xb0] sm:$0xff]  ;;  %v106_v31 = vld [vmem:[#allocation9 + $0xa8] sm:$0xff] }
  0x3e   :  { %338 = vmatprep.subr.mxu1 %v112_v13  ;;  %373 = vmatprep.subr.mxu0 %v534_v0  ;;  %v91_v29 = vld [vmem:[#allocation9 + $0x30] sm:$0xff]  ;;  %v90_v32 = vld [vmem:[#allocation9 + $0x28] sm:$0xff]  ;;  %v105_v34 = vld [vmem:[#allocation9 + $0xa0] sm:$0xff]  ;;  %p505_p11 = por %p504_p10, %p503_p9 }
  0x3f   :  { %339 = vmatpush3.msra.mxu1 %v96_v14  ;;  %374 = vmatpush3.msra.mxu0 %v128_v15  ;;  %v123_v30 = vld [vmem:[#allocation10 + $0x30] sm:$0xff]  ;;  %v122_v33 = vld [vmem:[#allocation10 + $0x28] sm:$0xff]  ;;  %v89_v35 = vld [vmem:[#allocation9 + $0x20] sm:$0xff] }
  0x40   :  { %340 = vmatprep.subr.mxu1 %v111_v16  ;;  %375 = vmatprep.subr.mxu0 %v534_v0  ;;  %v121_v36 = vld [vmem:[#allocation10 + $0x20] sm:$0xff]  ;;  %v104_v37 = vld [vmem:[#allocation9 + $0x98] sm:$0xff]  ;;  %v103_v40 = vld [vmem:[#allocation9 + $0x90] sm:$0xff]  ;;  %p506_p12 = pnand %p505_p11, %p499_p8 }
  0x41   :  { %341 = vmatpush3.msra.mxu1 %v95_v17  ;;  %376 = vmatpush3.msra.mxu0 %v127_v18  ;;  %v88_v38 = vld [vmem:[#allocation9 + $0x18] sm:$0xff]  ;;  %v87_v41 = vld [vmem:[#allocation9 + $0x10] sm:$0xff]  ;;  %v102_v43 = vld [vmem:[#allocation9 + $0x88] sm:$0xff] }
  0x42   :  { %342 = vmatprep.subr.mxu1 %v110_v19  ;;  %377 = vmatprep.subr.mxu0 %v534_v0  ;;  %v120_v39 = vld [vmem:[#allocation10 + $0x18] sm:$0xff]  ;;  %v119_v42 = vld [vmem:[#allocation10 + $0x10] sm:$0xff]  ;;  %v86_v44 = vld [vmem:[#allocation9 + $0x8] sm:$0xff] }
  0x43   :  { %343 = vmatpush3.msra.mxu1 %v94_v20  ;;  %378 = vmatpush3.msra.mxu0 %v126_v21  ;;  %v118_v45 = vld [vmem:[#allocation10 + $0x8] sm:$0xff]  ;;  %v101_v46 = vld [vmem:[#allocation9 + $0x80] sm:$0xff]  ;;  %v84_v47 = vld [vmem:[#allocation3 + $0x8] sm:$0xff] }
  0x44   :  { %344 = vmatprep.subr.mxu1 %v109_v22  ;;  %379 = vmatprep.subr.mxu0 %v534_v0  ;;  %v85_v49 = vld [vmem:[#allocation9] sm:$0xff]  ;;  %v83_v50 = vld [vmem:[#allocation3] sm:$0xff]  ;;  %v78_v52 = vld [vmem:[#allocation7] sm:$0xff] }
  0x45   :  { %345 = vmatpush3.msra.mxu1 %v93_v23  ;;  %380 = vmatpush3.msra.mxu0 %v125_v24  ;;  %v117_v51 = vld [vmem:[#allocation10] sm:$0xff] }
  0x46   :  { %346 = vmatprep.subr.mxu1 %v108_v25  ;;  %381 = vmatprep.subr.mxu0 %v534_v0 }
  0x47   :  { %347 = vmatpush3.msra.mxu1 %v92_v26  ;;  %382 = vmatpush3.msra.mxu0 %v124_v27 }
  0x48   :  { %348 = vmatprep.subr.mxu1 %v107_v28  ;;  %383 = vmatprep.subr.mxu0 %v534_v0 }
  0x49   :  { %349 = vmatpush3.msra.mxu1 %v91_v29  ;;  %384 = vmatpush3.msra.mxu0 %v123_v30 }
  0x4a   :  { %350 = vmatprep.subr.mxu1 %v106_v31  ;;  %385 = vmatprep.subr.mxu0 %v534_v0 }
  0x4b   :  { %351 = vmatpush3.msra.mxu1 %v90_v32  ;;  %386 = vmatpush3.msra.mxu0 %v122_v33 }
  0x4c   :  { %352 = vmatprep.subr.mxu1 %v105_v34  ;;  %387 = vmatprep.subr.mxu0 %v534_v0 }
  0x4d   :  { %353 = vmatpush3.msra.mxu1 %v89_v35  ;;  %388 = vmatpush3.msra.mxu0 %v121_v36 }
  0x4e   :  { %354 = vmatprep.subr.mxu1 %v104_v37  ;;  %389 = vmatprep.subr.mxu0 %v534_v0 }
  0x4f   :  { %355 = vmatpush3.msra.mxu1 %v88_v38  ;;  %390 = vmatpush3.msra.mxu0 %v120_v39 }
  0x50   :  { %356 = vmatprep.subr.mxu1 %v103_v40  ;;  %391 = vmatprep.subr.mxu0 %v534_v0 }
  0x51   :  { %357 = vmatpush3.msra.mxu1 %v87_v41  ;;  %392 = vmatpush3.msra.mxu0 %v119_v42 }
  0x52   :  { %358 = vmatprep.subr.mxu1 %v102_v43  ;;  %393 = vmatprep.subr.mxu0 %v534_v0 }
  0x53   :  { %359 = vmatpush3.msra.mxu1 %v86_v44  ;;  %394 = vmatpush3.msra.mxu0 %v118_v45 }
  0x54   :  { %360 = vmatprep.subr.mxu1 %v101_v46  ;;  %267 = vmatprep.mubr.f32.mxu1 %v84_v47 }
  0x55   :  { %361 = vmatpush3.msra.mxu1 %v85_v49  ;;  %395 = vmatprep.subr.mxu0 %v534_v0 }
  0x56   :  { %268 = vmatmul.mubr.f32.vlgmr.msra.gmra.mxu1 %v83_v50  ;;  %396 = vmatpush3.msra.mxu0 %v117_v51 }
  0x57   :  { %398 = vmatmul.mubr.msk.f32.vlgmr.msra.gmra.mxu0 %vm81_vm1, %v78_v52 }
 0x116   :  { %v362_v53 = vpop.f32.mrf.mxu1 }
 0x117   :  { %v199_v54 = vpop.f32.mrf.mxu0 }
 0x118   :  { %v363_v55 = vpop.f32.mrf.mxu1 }
 0x119   :  { %v364_v56 = vadd.f32 %v363_v55, %v362_v53  ;;  %v399_v57 = vpop.f32.mrf.mxu0 }
 0x11b   :  { %v270_v58 = vadd.f32 %v364_v56, %v199_v54 }
 0x11d   :  { %v312_v59 = vclamps-f32 %v270_v58, 1.0 }
 0x11f   :  { %275 = vst [vmem:[#allocation12] sm:$0xff] %v312_v59 }
 0x120   :  { %509 = shalt.err (!%p506_p12)
}
 0x121   :  { %290 = dma.vmem_to_hbm [thread:$0]  %s288_s28, 128, %s626_s5, [#allocation5]  }
 0x122   :  { %524 = dma.done.wait [#allocation5], 128  }
 0x123   :  { %525 = vsyncadd [#allocation5], 4294967168 }
 0x124   :  { %526 = dma.done.wait [#allocation6], 16  }
 0x125   :  { %527 = vsyncadd [#allocation6], 4294967280 }
 0x126   :  { %305 = sfence }
 0x127   :  { %306 = vsyncpa [#allocation4], 1 }
 0x128   :  { %307 = vsyncpa [#allocation8], 1 }
 0x129   :  { %308 = vsyncpa [#allocation11], 1 }
 0x12a   :  { %309 = vsyncpa [#allocation5], 1 }
 0x12b   :  { %310 = vsyncpa [#allocation6], 1 }

</bundles_post_ra>
